<compile_context>
chip_gen: v7x
topology: tpu7x:2x2x1
jax: 0.10.0
libtpu: 0.0.40
codegen_flags: <defaults>
</compile_context>

<pallas_src>
import functools

import jax
import jax.numpy as jnp
from jax import lax
from jax.experimental import pallas as pl
from jax.experimental.pallas import tpu as pltpu


def _fused_deconv_bn_lrelu_kernel(x_ref, f_ref, shift_ref, o_ref, *, cout, tr, slope):
    """One (batch, row-block) grid step, writing a final NCHW slab.

    x_ref     : (Cin*th, 2W)         column-duplicated input rows; row index = c*th + h
    f_ref     : (2*Cout*tr, Cin*th)  constant interleave weight, BN scale pre-folded
    shift_ref : (Cout, 1, 1)         fused BatchNorm shift (beta - mean*scale)
    o_ref     : (Cout, tr, 2W)       output rows [j*tr, (j+1)*tr) of the NCHW result
    """
    w2 = x_ref.shape[-1]
    # Single 2D MXU matmul: rows (b, o, r) x cols (c, h)  contracted against (c, h).
    y = lax.dot_general(
        f_ref[...], x_ref[...],
        dimension_numbers=(((1,), (0,)), ((), ())),
        preferred_element_type=jnp.float32)               # (2*Cout*tr, 2W)
    y0 = y[: cout * tr].reshape(cout, tr, w2)             # values valid at even lanes (kw=0)
    y1 = y[cout * tr:].reshape(cout, tr, w2)              # values valid at odd  lanes (kw=1)
    lane = lax.broadcasted_iota(jnp.int32, (cout, tr, w2), 2)
    z = jnp.where(lane % 2 == 0, y0, y1) + shift_ref[...]
    # LeakyReLU (slope in (0,1)) as a single max.
    o_ref[...] = jnp.maximum(z, slope * z)


def deconv_block_forward(x, weight, bias, gamma, beta, *, relu_slop=0.2, eps=1e-5):
    """DeconvBlock forward.  x is NCHW float32; returns NCHW (N, Cout, 2H, 2W) float32."""
    N, Cin, H, W = x.shape
    Cin_w, Cout, kh, kw = weight.shape
    assert Cin_w == Cin and (kh, kw) == (2, 2)
    HW = H * W
    M = N * HW
    Ccol = Cout * kh * kw
    W2 = 2 * W
    H2 = 2 * H

    x32 = x.astype(jnp.float32)
    w_flat = weight.reshape(Cin, Ccol).astype(jnp.float32)   # cols ordered (cout, kh, kw)

    # ---- BatchNorm2d training-mode batch statistics from a Cin x Cin Gram ----------
    # Conv bias is cancelled by the BN mean subtraction -> dropped (output unchanged).
    del bias
    # Uncentered Gram + mean correction avoids materializing a centered copy of x.
    sum_x = jnp.sum(x32, axis=(0, 2, 3))                      # (Cin,)
    mu_x = sum_x / M
    gram = jnp.einsum('nchw,ndhw->cd', x32, x32)              # (Cin, Cin)
    gram_c = gram - M * jnp.outer(mu_x, mu_x)                 # centered Gram
    nu_col = mu_x @ w_flat                                    # (Ccol,) per-column means
    css_col = jnp.sum(w_flat * (gram_c @ w_flat), axis=0)     # (Ccol,) centered sum of squares
    nu_c = nu_col.reshape(Cout, kh * kw)
    mean_c = nu_c.mean(axis=1)
    var_c = css_col.reshape(Cout, kh * kw).sum(axis=1) / (kh * kw * M) \
        + nu_c.var(axis=1)                                    # biased, like PyTorch training BN
    scale_c = gamma.astype(jnp.float32) / jnp.sqrt(var_c + eps)
    shift_c = beta.astype(jnp.float32) - mean_c * scale_c
    shift = shift_c.reshape(Cout, 1, 1)

    # ---- tiling ----------------------------------------------------------------------
    # th input rows per step (tr = 2*th output rows).  th=8 keeps both sublane alignment
    # and the folded-interleave matmul overhead (Cin*th FLOP/byte) small on all gens,
    # and gives >=2 parallel steps for v7x's two TensorCores whenever H >= 16.
    th = 8 if H % 8 == 0 else H
    # TODO(synk): for H not a multiple of 8 (and large), pad H instead of the th=H fallback.
    nb = H // th
    tr = 2 * th

    # ---- constant interleaving weight F (BN scale folded in) -------------------------
    # F[(b, o, r), (c, h)] = scale[o] * W[c, o, r%2, b] * [h == r//2]
    ws = w_flat.reshape(Cin, Cout, 2, 2) * scale_c[None, :, None, None]
    r_idx = jnp.arange(tr)
    a_of_r = r_idx % 2                                        # kh offset per output row
    row_sel = (r_idx[:, None] // 2 == jnp.arange(th)[None, :]).astype(jnp.float32)  # (tr, th)
    wsel = ws[:, :, a_of_r, :]                                # (Cin, Cout, tr, 2)
    f_full = wsel.transpose(3, 1, 2, 0)[..., None] * row_sel[None, None, :, None, :]
    f_cat = f_full.reshape(2 * Cout * tr, Cin * th)           # (2*Cout*tr, Cin*th)

    # ---- lane-duplicated, row-blocked input (one XLA copy pass over the SMALL input) --
    x2 = jnp.repeat(x32, 2, axis=-1)                           # (N, Cin, H, 2W)
    x2b = (x2.reshape(N, Cin, nb, th, W2)
              .transpose(0, 2, 1, 3, 4)
              .reshape(N, nb, Cin * th, W2))                   # rows = (c, h) within a block
    # TODO(synk): the repeat could be moved in-kernel (lane interleave) to shave the
    # remaining ~3x-of-input-size HBM traffic, at the cost of a Mosaic lane relayout.

    # ---- single fused Pallas pass: matmul + interleave + BN affine + LeakyReLU -------
    grid = (N, nb)
    in_blk = Cin * th * W2 * 4
    out_blk = Cout * tr * W2 * 4
    f_bytes = int(f_cat.size) * 4
    vmem_limit = int(min(48 * 1024 * 1024,
                         max(16 * 1024 * 1024,
                             3 * (in_blk + out_blk) + 2 * f_bytes + (2 << 20))))
    cost = pl.CostEstimate(
        flops=int(2 * (2 * Cout * tr) * (Cin * th) * W2 * N * nb),
        transcendentals=0,
        bytes_accessed=int(x2b.size * 4 + N * Cout * H2 * W2 * 4 + f_bytes + Cout * 4))

    out = pl.pallas_call(
        functools.partial(_fused_deconv_bn_lrelu_kernel,
                          cout=Cout, tr=tr, slope=relu_slop),
        out_shape=jax.ShapeDtypeStruct((N, Cout, H2, W2), jnp.float32),
        grid_spec=pltpu.PrefetchScalarGridSpec(
            num_scalar_prefetch=0,
            grid=grid,
            in_specs=[
                pl.BlockSpec((None, None, Cin * th, W2), lambda n, j: (n, j, 0, 0)),
                pl.BlockSpec((2 * Cout * tr, Cin * th), lambda n, j: (0, 0)),
                pl.BlockSpec((Cout, 1, 1), lambda n, j: (0, 0, 0)),
            ],
            out_specs=pl.BlockSpec((None, Cout, tr, W2), lambda n, j: (n, 0, j, 0)),
        ),
        compiler_params=pltpu.CompilerParams(
            dimension_semantics=("parallel", "parallel"),
            vmem_limit_bytes=vmem_limit),
        cost_estimate=cost,
    )(x2b, f_cat, shift)

    return out   # already NCHW (N, Cout, 2H, 2W): no post-kernel reshape/transpose


def reference_forward(x, weight, bias, gamma, beta, relu_slop=0.2, eps=1e-5):
    """Pure-JAX reference of the same forward (correctness check)."""
    N, Cin, H, W = x.shape
    _, Cout, kh, kw = weight.shape
    y = jnp.einsum('nchw,cokl->nohkwl', x, weight)
    y = y.reshape(N, Cout, H * kh, W * kw) + bias[None, :, None, None]
    mean = y.mean(axis=(0, 2, 3), keepdims=True)
    var = y.var(axis=(0, 2, 3), keepdims=True)      # biased, like PyTorch BN
    z = gamma[None, :, None, None] * (y - mean) / jnp.sqrt(var + eps) \
        + beta[None, :, None, None]
    return jnp.where(z >= 0, z, relu_slop * z)


if __name__ == "__main__":
    # Small shapes consistent with the module: batch=2, in_fea=4, out_fea=8,
    # spatial=16 -> output (2, 8, 32, 32).
    N, Cin, Cout, H, W = 2, 4, 8, 16, 16
    key = jax.random.PRNGKey(0)
    kx, kw_, kb, kg, kbt = jax.random.split(key, 5)

    x = jax.random.normal(kx, (N, Cin, H, W), dtype=jnp.float32)
    # ConvTranspose2d weight shape: (in_fea, out_fea, kH, kW)
    weight = 0.2 * jax.random.normal(kw_, (Cin, Cout, 2, 2), dtype=jnp.float32)
    bias = 0.1 * jax.random.normal(kb, (Cout,), dtype=jnp.float32)
    # BatchNorm2d affine params
    gamma = 1.0 + 0.1 * jax.random.normal(kg, (Cout,), dtype=jnp.float32)
    beta = 0.05 * jax.random.normal(kbt, (Cout,), dtype=jnp.float32)

    fwd = jax.jit(functools.partial(deconv_block_forward, relu_slop=0.2))
    out = fwd(x, weight, bias, gamma, beta)
    out = jax.block_until_ready(out)

    ref = reference_forward(x, weight, bias, gamma, beta, relu_slop=0.2)
    assert out.shape == (N, Cout, 2 * H, 2 * W)
    assert jnp.allclose(out, ref, rtol=1e-4, atol=1e-4), "mismatch vs reference"

    print("KERNEL_OK")
</pallas_src>

<mosaic_0001>
module attributes {stable_mosaic.version = 11 : i64} {
  func.func @_fused_deconv_bn_lrelu_kernel(%arg0: i32, %arg1: i32, %arg2: memref<1x1x32x32xf32, #tpu.memory_space<vmem>>, %arg3: memref<256x32xf32, #tpu.memory_space<vmem>>, %arg4: memref<8x1x1xf32, #tpu.memory_space<vmem>>, %arg5: memref<1x8x16x32xf32, #tpu.memory_space<vmem>>) attributes {dimension_semantics = [#tpu.dimension_semantics<parallel>, #tpu.dimension_semantics<parallel>], iteration_bounds = array<i64: 2, 2>, scalar_prefetch = 0 : i64, scratch_operands = 0 : i64, tpu.core_type = #tpu.core_type<tc>, window_params = [{transform_indices = @transform_0, window_bounds = array<i64: 1, 1, 32, 32>}, {pipeline_mode = #tpu.pipeline_mode<synchronous>, transform_indices = @transform_1, window_bounds = array<i64: 256, 32>}, {pipeline_mode = #tpu.pipeline_mode<synchronous>, transform_indices = @transform_2, window_bounds = array<i64: 8, 1, 1>}, {transform_indices = @transform_3, window_bounds = array<i64: 1, 8, 16, 32>}]} {
    %c0 = arith.constant 0 : index
    %c0_0 = arith.constant 0 : index
    %0 = vector.load %arg3[%c0, %c0_0] : memref<256x32xf32, #tpu.memory_space<vmem>>, vector<256x32xf32>
    %c0_1 = arith.constant 0 : index
    %c0_2 = arith.constant 0 : index
    %c0_3 = arith.constant 0 : index
    %c0_4 = arith.constant 0 : index
    %1 = vector.load %arg2[%c0_1, %c0_2, %c0_3, %c0_4] : memref<1x1x32x32xf32, #tpu.memory_space<vmem>>, vector<1x1x32x32xf32>
    %2 = vector.shape_cast %1 : vector<1x1x32x32xf32> to vector<32x32xf32>
    %cst = arith.constant dense<0.000000e+00> : vector<256x32xf32>
    %3 = tpu.matmul %0, %2, %cst {dimension_numbers = #tpu.dot_dimension_numbers<[1], [0], [0], [1], [0, 0, 1, 1], [], []>} : vector<256x32xf32>, vector<32x32xf32>, vector<256x32xf32> -> vector<256x32xf32>
    %4 = vector.extract_strided_slice %3 {offsets = [0, 0], sizes = [128, 32], strides = [1, 1]} : vector<256x32xf32> to vector<128x32xf32>
    %5 = vector.shape_cast %4 : vector<128x32xf32> to vector<8x16x32xf32>
    %6 = vector.extract_strided_slice %3 {offsets = [128, 0], sizes = [128, 32], strides = [1, 1]} : vector<256x32xf32> to vector<128x32xf32>
    %7 = vector.shape_cast %6 : vector<128x32xf32> to vector<8x16x32xf32>
    %8 = tpu.iota {dimensions = array<i32: 2>} : vector<8x16x32xi32>
    %c2_i32 = arith.constant 2 : i32
    %c0_i32 = arith.constant 0 : i32
    %9 = arith.cmpi eq, %c2_i32, %c0_i32 : i32
    %c1_i32 = arith.constant 1 : i32
    %10 = arith.select %9, %c1_i32, %c2_i32 : i32
    %11 = vector.broadcast %10 : i32 to vector<8x16x32xi32>
    %12 = arith.remsi %8, %11 : vector<8x16x32xi32>
    %c0_i32_5 = arith.constant 0 : i32
    %13 = vector.broadcast %c0_i32_5 : i32 to vector<8x16x32xi32>
    %14 = arith.cmpi ne, %12, %13 : vector<8x16x32xi32>
    %c0_i32_6 = arith.constant 0 : i32
    %15 = vector.broadcast %c0_i32_6 : i32 to vector<8x16x32xi32>
    %16 = arith.cmpi slt, %12, %15 : vector<8x16x32xi32>
    %c0_i32_7 = arith.constant 0 : i32
    %17 = arith.cmpi slt, %10, %c0_i32_7 : i32
    %18 = vector.broadcast %17 : i1 to vector<8x16x32xi1>
    %19 = vector.broadcast %18 : vector<8x16x32xi1> to vector<8x16x32xi1>
    %20 = arith.xori %16, %19 : vector<8x16x32xi1>
    %21 = arith.andi %20, %14 : vector<8x16x32xi1>
    %22 = vector.broadcast %10 : i32 to vector<8x16x32xi32>
    %23 = arith.addi %12, %22 : vector<8x16x32xi32>
    %24 = arith.select %21, %23, %12 : vector<8x16x32xi1>, vector<8x16x32xi32>
    %c0_i32_8 = arith.constant 0 : i32
    %25 = vector.broadcast %c0_i32_8 : i32 to vector<8x16x32xi32>
    %26 = arith.cmpi eq, %24, %25 : vector<8x16x32xi32>
    %27 = arith.select %26, %5, %7 : vector<8x16x32xi1>, vector<8x16x32xf32>
    %c0_9 = arith.constant 0 : index
    %c0_10 = arith.constant 0 : index
    %c0_11 = arith.constant 0 : index
    %28 = vector.load %arg4[%c0_9, %c0_10, %c0_11] : memref<8x1x1xf32, #tpu.memory_space<vmem>>, vector<8x1x1xf32>
    %29 = vector.broadcast %28 : vector<8x1x1xf32> to vector<8x16x32xf32>
    %30 = arith.addf %27, %29 : vector<8x16x32xf32>
    %cst_12 = arith.constant 2.000000e-01 : f32
    %31 = vector.broadcast %cst_12 : f32 to vector<8x16x32xf32>
    %32 = arith.mulf %31, %30 : vector<8x16x32xf32>
    %33 = arith.maximumf %30, %32 : vector<8x16x32xf32>
    %c0_13 = arith.constant 0 : index
    %c0_14 = arith.constant 0 : index
    %c0_15 = arith.constant 0 : index
    %c0_16 = arith.constant 0 : index
    %34 = vector.load %arg5[%c0_13, %c0_14, %c0_15, %c0_16] : memref<1x8x16x32xf32, #tpu.memory_space<vmem>>, vector<1x8x16x32xf32>
    %35 = vector.shape_cast %34 : vector<1x8x16x32xf32> to vector<8x16x32xf32>
    %36 = vector.shape_cast %33 : vector<8x16x32xf32> to vector<1x8x16x32xf32>
    tpu.vector_store %arg5[%c0_13, %c0_14, %c0_15, %c0_16], %36 {strides = array<i32>} : memref<1x8x16x32xf32, #tpu.memory_space<vmem>>, vector<1x8x16x32xf32>,
    return
  }
  func.func @transform_0(%arg0: i32, %arg1: i32) -> (i32, i32, i32, i32) {
    %c0_i32 = arith.constant 0 : i32
    %c0_i32_0 = arith.constant 0 : i32
    %c0_i32_1 = arith.constant 0 : i32
    return %arg0, %arg1, %c0_i32, %c0_i32_0 : i32, i32, i32, i32
  }
  func.func @transform_1(%arg0: i32, %arg1: i32) -> (i32, i32) {
    %c0_i32 = arith.constant 0 : i32
    %c0_i32_0 = arith.constant 0 : i32
    %c0_i32_1 = arith.constant 0 : i32
    return %c0_i32, %c0_i32_0 : i32, i32
  }
  func.func @transform_2(%arg0: i32, %arg1: i32) -> (i32, i32, i32) {
    %c0_i32 = arith.constant 0 : i32
    %c0_i32_0 = arith.constant 0 : i32
    %c0_i32_1 = arith.constant 0 : i32
    %c0_i32_2 = arith.constant 0 : i32
    return %c0_i32, %c0_i32_0, %c0_i32_1 : i32, i32, i32
  }
  func.func @transform_3(%arg0: i32, %arg1: i32) -> (i32, i32, i32, i32) {
    %c0_i32 = arith.constant 0 : i32
    %c0_i32_0 = arith.constant 0 : i32
    %c0_i32_1 = arith.constant 0 : i32
    return %arg0, %c0_i32, %arg1, %c0_i32_0 : i32, i32, i32, i32
  }
}

</mosaic_0001>

<bundles_post_ra>
// kernel: deconv_block_forward.1
= control target key start
LH: loop header
LB: loop body
LE: loop exit
PB: predicated region body
PF: predicated region fallthrough
CT: control target
= control target key end

     0   :  { %8 = vsyncpa [#allocation3], 0  ;;  %s1556_s0 = inlined_call_operand.vmem [shape: f32[2,2,32,32], index: 0, kind: input, shape index: {}]   ;;  %s1557_s1 = inlined_call_operand.vmem [shape: f32[256,32], index: 1, kind: input, shape index: {}]   ;;  %s1558_s2 = inlined_call_operand.vmem [shape: f32[8,1,1], index: 2, kind: input, shape index: {}]   ;;  %s1559_s3 = inlined_call_operand.hbm [shape: f32[2,8,32,32], index: 3, kind: output, shape index: {}]  }
   0x1   :  { %10 = vsyncpa [#allocation3 + $0x1], 0  ;;  %s1203_s12 = smov 0   ;;  %s1205_s13 = smov 0  }
   0x2   :  { %s1207_s14 = smov 0   ;;  %s1209_s15 = smov 0  }
   0x3   :  { %s1211_s16 = smov 0   ;;  %s1213_s17 = smov 0  }
   0x4   :  { %s1215_s18 = smov 0   ;;  %s1217_s19 = smov 0  }
   0x5 LB: > { %s861_s20 = sadd.s32 4294967295, %s1173_s19   ;;  %s862_s21 = sadd.s32 4294967294, %s1173_s19   ;;  %s1173_s19 = sphi %s1217_s19, %s16_s19   ;;  %s1169_s18 = sphi %s1215_s18, %s1570_s18   ;;  %s1165_s17 = sphi %s1213_s17, %s1569_s17   ;;  %s1161_s16 = sphi %s1211_s16, %s1568_s16   ;;  %s1157_s15 = sphi %s1209_s15, %s1567_s15   ;;  %s1153_s14 = sphi %s1207_s14, %s1566_s14   ;;  %s1149_s13 = sphi %s1205_s13, %s1565_s13   ;;  %s1145_s12 = sphi %s1203_s12, %s1564_s12  }
   0x6   : > { %s25_s22 = sadd.s32 1, %s1165_s17  ;;  %s28_s23 = sadd.s32 1, %s1169_s18 }
   0x7   : > { %p26_p0 = scmp.ge.s32.totalorder %s25_s22, 2  ;;  %p117_p1 = scmp.ne.s32.totalorder %s1153_s14, %s1149_s13 }
   0x8   : > { %p118_p2 = scmp.eq.s32.totalorder %s861_s20, 3  ;;  %p123_p5 = scmp.ne.s32.totalorder %s1149_s13, %s1145_s12 }
   0x9   : > { %s1572_s22 = smov (%p26_p0, %s25_s22), 0  ;;  %s1574_s23 = smov (!%p26_p0, %s28_s23), %s1169_s18 }
   0xa   : > { %s103_s24 = ssub.s32 %s1165_s17, %s1572_s22  ;;  %p1254_p3 = por %p118_p2, %p117_p1 }
   0xb   : > { %p30_p4 = scmp.ge.s32.totalorder %s1574_s23, 2  ;;  %p124_p6 = scmp.eq.s32.totalorder %s862_s21, 3 }
   0xc   : > { %p865_p7 = scmp.ge.s32.totalorder %s1173_s19, 1  ;;  %p160_p9 = scmp.lt.s32.totalorder %s1173_s19, 5 }
   0xd   : > { %s1576_s23 = smov (%p30_p4, %s1574_s23), 0  ;;  %p1263_p8 = por %p124_p6, %p123_p5 }
   0xe   : > { %s102_s27 = ssub.s32 %s1169_s18, %s1576_s23  ;;  %s107_s28 = sadd.s32 1, %s1153_s14 }
   0xf   : > { %s104_s29 = sor.u32 %s103_s24, %s102_s27  ;;  %p161_p10 = pnand %p865_p7, %p160_p9 }
  0x10   : > { %p105_p11 = scmp.eq.s32.totalorder %s104_s29, 0  ;;  %p188_p12 = scmp.lt.s32.totalorder (!%p161_p10), %s1161_s16, 1  ;;  %v198_v0 = vld [vmem:[%s1557_s1] sm:$0xff] (!%p161_p10)  ;;  %vm234_vm0 = vcmask (!%p161_p10), 261120   ;;  %v1175_v2 = vmov (!%p161_p10), 0   ;;  %v199_v13 = vld [vmem:[%s1557_s1 + $0x8] sm:$0xff] (!%p161_p10)  ;;  %v556_v47 = vlaneseq (!%p161_p10) }
  0x11   : > { %164 = sbr.rel (%p161_p10) target bundleno = 302 (0x12e), region = 32  ;;  %p190_p13 = scmp.lt.s32.totalorder (!%p161_p10), %s1157_s15, 1  ;;  %v214_v1 = vld [vmem:[%s1557_s1 + $0x80] sm:$0xff] (!%p161_p10)  ;;  %960 = vmatprep.mubr.msk.f32.mxu0 (!%p161_p10), %vm234_vm0, %v198_v0  ;;  %1105 = vset.pattern.permute.xlu0 (!%p161_p10), %v1175_v2  ;;  %v215_v14 = vld [vmem:[%s1557_s1 + $0x88] sm:$0xff] (!%p161_p10)  ;;  %v200_v15 = vld [vmem:[%s1557_s1 + $0x10] sm:$0xff] (!%p161_p10) }
  0x12   : > { %s1272_s30 = scalar_select %p105_p11, %s1153_s14, %s107_s28  }
  0x13   : > { %984 = vmatprep.mubr.msk.f32.mxu1 (!%p161_p10), %vm234_vm0, %v214_v1  ;;  %1106 = vset.pattern.permute.xlu1 (!%p161_p10), %v1175_v2  ;;  %v902_v9 = vld [vmem:[%s1558_s2] ss:$0 sm:$0xff] (!%p161_p10)  ;;  %v904_v10 = vld [vmem:[%s1558_s2 + $0x2] ss:$0 sm:$0xff] (!%p161_p10)  ;;  %v903_v11 = vld [vmem:[%s1558_s2 + $0x1] ss:$0 sm:$0xff] (!%p161_p10) }
  0x14   : > { %636 = vperm.xlu0 (!%p161_p10), %1105, %v902_v9   ;;  %644 = vperm.xlu1 (!%p161_p10), %1106, %v904_v10   ;;  %v905_v12 = vld [vmem:[%s1558_s2 + $0x3] ss:$0 sm:$0xff] (!%p161_p10)  ;;  %v216_v16 = vld [vmem:[%s1557_s1 + $0x90] sm:$0xff] (!%p161_p10)  ;;  %v907_v17 = vld [vmem:[%s1558_s2 + $0x5] ss:$0 sm:$0xff] (!%p161_p10)  ;;  %v557_v48 = vand.u32 (!%p161_p10), 127, %v556_v47 }
  0x15   : > { %v906_v18 = vld [vmem:[%s1558_s2 + $0x4] ss:$0 sm:$0xff] (!%p161_p10)  ;;  %v201_v19 = vld [vmem:[%s1557_s1 + $0x18] sm:$0xff] (!%p161_p10)  ;;  %v909_v23 = vld [vmem:[%s1558_s2 + $0x7] ss:$0 sm:$0xff] (!%p161_p10) }
  0x16   : > { %v217_v20 = vld [vmem:[%s1557_s1 + $0x98] sm:$0xff] (!%p161_p10)  ;;  %v202_v21 = vld [vmem:[%s1557_s1 + $0x20] sm:$0xff] (!%p161_p10)  ;;  %v203_v25 = vld [vmem:[%s1557_s1 + $0x28] sm:$0xff] (!%p161_p10)  ;;  %v562_v49 = vand.u32 (!%p161_p10), 1, %v557_v48 }
  0x17   : > { %v218_v22 = vld [vmem:[%s1557_s1 + $0xa0] sm:$0xff] (!%p161_p10)  ;;  %v219_v26 = vld [vmem:[%s1557_s1 + $0xa8] sm:$0xff] (!%p161_p10)  ;;  %v204_v27 = vld [vmem:[%s1557_s1 + $0x30] sm:$0xff] (!%p161_p10) }
  0x18   : > { %s189_s8 = scalar_select %p188_p12, %s1161_s16, 1  ;;  %640 = vperm.xlu0 %1105, %v903_v11   ;;  %648 = vperm.xlu1 %1106, %v905_v12   ;;  %v908_v24 = vld [vmem:[%s1558_s2 + $0x6] ss:$0 sm:$0xff]  ;;  %v220_v28 = vld [vmem:[%s1557_s1 + $0xb0] sm:$0xff]  ;;  %v205_v29 = vld [vmem:[%s1557_s1 + $0x38] sm:$0xff]  ;;  %vm1434_vm1 = vcmp.eq.s32.totalorder %v562_v49, 0 }
  0x19   : > { %s191_s9 = scalar_select %p190_p13, %s1157_s15, 1  ;;  %v221_v30 = vld [vmem:[%s1557_s1 + $0xb8] sm:$0xff]  ;;  %v206_v31 = vld [vmem:[%s1557_s1 + $0x40] sm:$0xff]  ;;  %v207_v33 = vld [vmem:[%s1557_s1 + $0x48] sm:$0xff] }
  0x1a   : > { %s868_s10 = sshll.u32 %s189_s8, 3  ;;  %v222_v32 = vld [vmem:[%s1557_s1 + $0xc0] sm:$0xff]  ;;  %v223_v34 = vld [vmem:[%s1557_s1 + $0xc8] sm:$0xff]  ;;  %v208_v35 = vld [vmem:[%s1557_s1 + $0x50] sm:$0xff] }
  0x1b   : > { %s867_s11 = sshll.u32 %s191_s9, 2  ;;  %v224_v36 = vld [vmem:[%s1557_s1 + $0xd0] sm:$0xff]  ;;  %v209_v37 = vld [vmem:[%s1557_s1 + $0x58] sm:$0xff]  ;;  %v210_v39 = vld [vmem:[%s1557_s1 + $0x60] sm:$0xff]  ;;  %s185_s9 = sand.u32 1, %s1149_s13  }
  0x1c   : > { %s194_s20 = sadd.s32 %s868_s10, %s867_s11  ;;  %656 = vperm.xlu1 %1106, %v907_v17   ;;  %652 = vperm.xlu0 %1105, %v906_v18   ;;  %v225_v38 = vld [vmem:[%s1557_s1 + $0xd8] sm:$0xff]  ;;  %v226_v40 = vld [vmem:[%s1557_s1 + $0xe0] sm:$0xff]  ;;  %v211_v41 = vld [vmem:[%s1557_s1 + $0x68] sm:$0xff]  ;;  %s866_s10 = sshll.u32 %s185_s9, 7 }
  0x1d   : > { %s869_s21 = sshll.u32 %s194_s20, 3  ;;  %v227_v42 = vld [vmem:[%s1557_s1 + $0xe8] sm:$0xff]  ;;  %v212_v43 = vld [vmem:[%s1557_s1 + $0x70] sm:$0xff]  ;;  %v213_v45 = vld [vmem:[%s1557_s1 + $0x78] sm:$0xff]  ;;  %s1448_s11 = scalar_lea.vmem [#allocation2], %s866_s10 }
  0x1e   : > { %s196_s28 = scalar_lea.vmem %s1556_s0, %s869_s21  ;;  %v228_v44 = vld [vmem:[%s1557_s1 + $0xf0] sm:$0xff]  ;;  %v229_v46 = vld [vmem:[%s1557_s1 + $0xf8] sm:$0xff]  ;;  %s732_s20 = scalar_lea.sflag [#allocation3], %s185_s9 }
  0x1f   : > { %v230_v3 = vld [vmem:[%s196_s28] sm:$0xff]  ;;  %v231_v4 = vld [vmem:[%s196_s28 + $0x8] sm:$0xff]  ;;  %v232_v5 = vld [vmem:[%s196_s28 + $0x10] sm:$0xff] }
  0x20   : > { %v1008_v6 = vpack.c.bf16 %v231_v4, %v230_v3  ;;  %v233_v7 = vld [vmem:[%s196_s28 + $0x18] sm:$0xff]  ;;  %664 = vperm.xlu1 %1106, %v909_v23   ;;  %660 = vperm.xlu0 %1105, %v908_v24  }
  0x21   : > { %v1012_v8 = vpack.c.bf16 %v233_v7, %v232_v5 }
  0x22   : > { %1009 = vmatprep.subr.bf16.mxu0 %v1008_v6  ;;  %1016 = vmatprep.subr.bf16.mxu1 %v1008_v6 }
  0x23   : > { %1011 = vmatpush3.bf16.msra.mxu0 %v1008_v6  ;;  %1018 = vmatpush3.bf16.msra.mxu1 %v1008_v6 }
  0x24   : > { %1013 = vmatprep.subr.bf16.mxu0 %v1012_v8  ;;  %1017 = vmatprep.subr.bf16.mxu1 %v1012_v8 }
  0x27   : > { %1015 = vmatpush3.bf16.msra.mxu0 %v1012_v8  ;;  %1019 = vmatpush3.bf16.msra.mxu1 %v1012_v8 }
  0x2a   : > { %961 = vmatmul.mubr.msk.f32.vlgmr.msra.gmra.mrb[0].mxu0 %vm234_vm0, %v199_v13  ;;  %985 = vmatmul.mubr.msk.f32.vlgmr.msra.gmra.mrb[0].mxu1 %vm234_vm0, %v215_v14 }
  0x2b   : > { %963 = vmatprep.mubr.msk.f32.mxu0 %vm234_vm0, %v200_v15  ;;  %987 = vmatprep.mubr.msk.f32.mxu1 %vm234_vm0, %v216_v16 }
  0x2e   : > { %964 = vmatmul.mubr.msk.f32.gmra.mrb[2].mxu0 %vm234_vm0, %v201_v19  ;;  %988 = vmatmul.mubr.msk.f32.gmra.mrb[2].mxu1 %vm234_vm0, %v217_v20 }
  0x2f   : > { %966 = vmatprep.mubr.msk.f32.mxu0 %vm234_vm0, %v202_v21  ;;  %990 = vmatprep.mubr.msk.f32.mxu1 %vm234_vm0, %v218_v22 }
  0x32   : > { %967 = vmatmul.mubr.msk.f32.gmra.mrb[4].mxu0 %vm234_vm0, %v203_v25  ;;  %991 = vmatmul.mubr.msk.f32.gmra.mrb[4].mxu1 %vm234_vm0, %v219_v26 }
  0x33   : > { %969 = vmatprep.mubr.msk.f32.mxu0 %vm234_vm0, %v204_v27  ;;  %993 = vmatprep.mubr.msk.f32.mxu1 %vm234_vm0, %v220_v28 }
  0x36   : > { %970 = vmatmul.mubr.msk.f32.gmra.mrb[6].mxu0 %vm234_vm0, %v205_v29  ;;  %994 = vmatmul.mubr.msk.f32.gmra.mrb[6].mxu1 %vm234_vm0, %v221_v30 }
  0x37   : > { %972 = vmatprep.mubr.msk.f32.mxu0 %vm234_vm0, %v206_v31  ;;  %996 = vmatprep.mubr.msk.f32.mxu1 %vm234_vm0, %v222_v32 }
  0x3a   : > { %973 = vmatmul.mubr.msk.f32.gmra.mrb[8].mxu0 %vm234_vm0, %v207_v33  ;;  %997 = vmatmul.mubr.msk.f32.gmra.mrb[8].mxu1 %vm234_vm0, %v223_v34 }
  0x3b   : > { %975 = vmatprep.mubr.msk.f32.mxu0 %vm234_vm0, %v208_v35  ;;  %999 = vmatprep.mubr.msk.f32.mxu1 %vm234_vm0, %v224_v36 }
  0x3e   : > { %976 = vmatmul.mubr.msk.f32.gmra.mrb[10].mxu0 %vm234_vm0, %v209_v37  ;;  %1000 = vmatmul.mubr.msk.f32.gmra.mrb[10].mxu1 %vm234_vm0, %v225_v38 }
  0x3f   : > { %978 = vmatprep.mubr.msk.f32.mxu0 %vm234_vm0, %v210_v39  ;;  %1002 = vmatprep.mubr.msk.f32.mxu1 %vm234_vm0, %v226_v40 }
  0x42   : > { %979 = vmatmul.mubr.msk.f32.gmra.mrb[12].mxu0 %vm234_vm0, %v211_v41  ;;  %1003 = vmatmul.mubr.msk.f32.gmra.mrb[12].mxu1 %vm234_vm0, %v227_v42 }
  0x43   : > { %981 = vmatprep.mubr.msk.f32.mxu0 %vm234_vm0, %v212_v43  ;;  %1005 = vmatprep.mubr.msk.f32.mxu1 %vm234_vm0, %v228_v44 }
  0x46   : > { %982 = vmatmul.mubr.msk.f32.gmra.mrb[14].mxu0 %vm234_vm0, %v213_v45  ;;  %1006 = vmatmul.mubr.msk.f32.gmra.mrb[14].mxu1 %vm234_vm0, %v229_v46 }
  0x93   : > { %v637_v50 = vpop.permute.xlu0 %636  ;;  %v645_v61 = vpop.permute.xlu1 %644 }
  0x97   : > { %v641_v60 = vpop.permute.xlu0 %640  ;;  %v649_v22 = vpop.permute.xlu1 %648 }
  0x9b   : > { %v653_v35 = vpop.permute.xlu0 %652  ;;  %v657_v47 = vpop.permute.xlu1 %656 }
  0xfd   : > { %v962_v52 = vpop.f32.mrb[0].mxu0  ;;  %v986_v53 = vpop.f32.mrb[0].mxu1 }
  0xfe   : > { %v572_v54 = vsel %vm1434_vm1, %v962_v52, %v986_v53  ;;  %v397_v55 = vpop.f32.mrb[1].mxu0  ;;  %v477_v56 = vpop.f32.mrb[1].mxu1 }
  0xff   : > { %v668_v57 = vadd.f32 %v637_v50, %v572_v54  ;;  %v571_v58 = vsel %vm1434_vm1, %v397_v55, %v477_v56 }
 0x100   : > { %v667_v59 = vadd.f32 %v637_v50, %v571_v58 }
 0x101   : > { %v684_v62 = vmul.f32 0.2, %v668_v57  ;;  %v965_v63 = vpop.f32.mrb[2].mxu0  ;;  %v989_v0 = vpop.f32.mrb[2].mxu1 }
 0x102   : > { %v683_v1 = vmul.f32 0.2, %v667_v59  ;;  %v574_v2 = vsel %vm1434_vm1, %v965_v63, %v989_v0  ;;  %v407_v3 = vpop.f32.mrb[3].mxu0  ;;  %v487_v4 = vpop.f32.mrb[3].mxu1 }
 0x103   : > { %v700_v5 = vmax.f32 %v668_v57, %v684_v62  ;;  %v670_v6 = vadd.f32 %v641_v60, %v574_v2  ;;  %v573_v7 = vsel %vm1434_vm1, %v407_v3, %v487_v4 }
 0x104   : > { %v699_v8 = vmax.f32 %v667_v59, %v683_v1  ;;  %v669_v9 = vadd.f32 %v641_v60, %v573_v7 }
 0x105   : > { %716 = vst.msk [vmem:[%s1448_s11 + $0x8] sm:$0xff] %vm234_vm0, %v700_v5  ;;  %v686_v10 = vmul.f32 0.2, %v670_v6  ;;  %v968_v11 = vpop.f32.mrb[4].mxu0  ;;  %v992_v12 = vpop.f32.mrb[4].mxu1 }
 0x106   : > { %715 = vst.msk [vmem:[%s1448_s11] sm:$0xff] %vm234_vm0, %v699_v8  ;;  %v685_v13 = vmul.f32 0.2, %v669_v9  ;;  %v576_v14 = vsel %vm1434_vm1, %v968_v11, %v992_v12  ;;  %v417_v15 = vpop.f32.mrb[5].mxu0  ;;  %v497_v16 = vpop.f32.mrb[5].mxu1 }
 0x107   : > { %v702_v17 = vmax.f32 %v670_v6, %v686_v10  ;;  %v672_v18 = vadd.f32 %v645_v61, %v576_v14  ;;  %v575_v19 = vsel %vm1434_vm1, %v417_v15, %v497_v16 }
 0x108   : > { %v701_v20 = vmax.f32 %v669_v9, %v685_v13  ;;  %v671_v21 = vadd.f32 %v645_v61, %v575_v19  ;;  %v661_v61 = vpop.permute.xlu0 %660  ;;  %v665_v9 = vpop.permute.xlu1 %664 }
 0x109   : > { %718 = vst.msk [vmem:[%s1448_s11 + $0x18] sm:$0xff] %vm234_vm0, %v702_v17  ;;  %v688_v23 = vmul.f32 0.2, %v672_v18  ;;  %v971_v24 = vpop.f32.mrb[6].mxu0  ;;  %v995_v25 = vpop.f32.mrb[6].mxu1 }
 0x10a   : > { %717 = vst.msk [vmem:[%s1448_s11 + $0x10] sm:$0xff] %vm234_vm0, %v701_v20  ;;  %v687_v26 = vmul.f32 0.2, %v671_v21  ;;  %v578_v27 = vsel %vm1434_vm1, %v971_v24, %v995_v25  ;;  %v427_v28 = vpop.f32.mrb[7].mxu0  ;;  %v507_v29 = vpop.f32.mrb[7].mxu1 }
 0x10b   : > { %v704_v30 = vmax.f32 %v672_v18, %v688_v23  ;;  %v674_v31 = vadd.f32 %v649_v22, %v578_v27  ;;  %v577_v32 = vsel %vm1434_vm1, %v427_v28, %v507_v29 }
 0x10c   : > { %v703_v33 = vmax.f32 %v671_v21, %v687_v26  ;;  %v673_v34 = vadd.f32 %v649_v22, %v577_v32 }
 0x10d   : > { %720 = vst.msk [vmem:[%s1448_s11 + $0x28] sm:$0xff] %vm234_vm0, %v704_v30  ;;  %v690_v36 = vmul.f32 0.2, %v674_v31  ;;  %v974_v37 = vpop.f32.mrb[8].mxu0  ;;  %v998_v38 = vpop.f32.mrb[8].mxu1 }
 0x10e   : > { %719 = vst.msk [vmem:[%s1448_s11 + $0x20] sm:$0xff] %vm234_vm0, %v703_v33  ;;  %v689_v39 = vmul.f32 0.2, %v673_v34  ;;  %v580_v40 = vsel %vm1434_vm1, %v974_v37, %v998_v38  ;;  %v437_v41 = vpop.f32.mrb[9].mxu0  ;;  %v517_v42 = vpop.f32.mrb[9].mxu1 }
 0x10f   : > { %v706_v43 = vmax.f32 %v674_v31, %v690_v36  ;;  %v676_v44 = vadd.f32 %v653_v35, %v580_v40  ;;  %v579_v45 = vsel %vm1434_vm1, %v437_v41, %v517_v42 }
 0x110   : > { %v705_v46 = vmax.f32 %v673_v34, %v689_v39  ;;  %v675_v48 = vadd.f32 %v653_v35, %v579_v45 }
 0x111   : > { %722 = vst.msk [vmem:[%s1448_s11 + $0x38] sm:$0xff] %vm234_vm0, %v706_v43  ;;  %v692_v49 = vmul.f32 0.2, %v676_v44  ;;  %v977_v50 = vpop.f32.mrb[10].mxu0  ;;  %v1001_v52 = vpop.f32.mrb[10].mxu1 }
 0x112   : > { %721 = vst.msk [vmem:[%s1448_s11 + $0x30] sm:$0xff] %vm234_vm0, %v705_v46  ;;  %v691_v53 = vmul.f32 0.2, %v675_v48  ;;  %v582_v54 = vsel %vm1434_vm1, %v977_v50, %v1001_v52  ;;  %v447_v55 = vpop.f32.mrb[11].mxu0  ;;  %v527_v56 = vpop.f32.mrb[11].mxu1 }
 0x113   : > { %v708_v57 = vmax.f32 %v676_v44, %v692_v49  ;;  %v678_v58 = vadd.f32 %v657_v47, %v582_v54  ;;  %v581_v59 = vsel %vm1434_vm1, %v447_v55, %v527_v56 }
 0x114   : > { %v707_v60 = vmax.f32 %v675_v48, %v691_v53  ;;  %v677_v62 = vadd.f32 %v657_v47, %v581_v59 }
 0x115   : > { %724 = vst.msk [vmem:[%s1448_s11 + $0x48] sm:$0xff] %vm234_vm0, %v708_v57  ;;  %v694_v63 = vmul.f32 0.2, %v678_v58  ;;  %v980_v0 = vpop.f32.mrb[12].mxu0  ;;  %v1004_v1 = vpop.f32.mrb[12].mxu1 }
 0x116   : > { %723 = vst.msk [vmem:[%s1448_s11 + $0x40] sm:$0xff] %vm234_vm0, %v707_v60  ;;  %v693_v2 = vmul.f32 0.2, %v677_v62  ;;  %v584_v3 = vsel %vm1434_vm1, %v980_v0, %v1004_v1  ;;  %v457_v4 = vpop.f32.mrb[13].mxu0  ;;  %v537_v5 = vpop.f32.mrb[13].mxu1 }
 0x117   : > { %v710_v6 = vmax.f32 %v678_v58, %v694_v63  ;;  %v680_v7 = vadd.f32 %v661_v61, %v584_v3  ;;  %v583_v8 = vsel %vm1434_vm1, %v457_v4, %v537_v5 }
 0x118   : > { %v709_v10 = vmax.f32 %v677_v62, %v693_v2  ;;  %v679_v11 = vadd.f32 %v661_v61, %v583_v8 }
 0x119   : > { %726 = vst.msk [vmem:[%s1448_s11 + $0x58] sm:$0xff] %vm234_vm0, %v710_v6  ;;  %v696_v12 = vmul.f32 0.2, %v680_v7  ;;  %v983_v13 = vpop.f32.mrb[14].mxu0  ;;  %v1007_v14 = vpop.f32.mrb[14].mxu1 }
 0x11a   : > { %725 = vst.msk [vmem:[%s1448_s11 + $0x50] sm:$0xff] %vm234_vm0, %v709_v10  ;;  %v695_v15 = vmul.f32 0.2, %v679_v11  ;;  %v586_v16 = vsel %vm1434_vm1, %v983_v13, %v1007_v14  ;;  %v467_v17 = vpop.f32.mrb[15].mxu0  ;;  %v547_v18 = vpop.f32.mrb[15].mxu1 }
 0x11b   : > { %v712_v19 = vmax.f32 %v680_v7, %v696_v12  ;;  %v682_v20 = vadd.f32 %v665_v9, %v586_v16  ;;  %v585_v21 = vsel %vm1434_vm1, %v467_v17, %v547_v18 }
 0x11c   : > { %v711_v22 = vmax.f32 %v679_v11, %v695_v15  ;;  %v681_v23 = vadd.f32 %v665_v9, %v585_v21 }
 0x11d   : > { %728 = vst.msk [vmem:[%s1448_s11 + $0x68] sm:$0xff] %vm234_vm0, %v712_v19  ;;  %v698_v24 = vmul.f32 0.2, %v682_v20 }
 0x11e   : > { %727 = vst.msk [vmem:[%s1448_s11 + $0x60] sm:$0xff] %vm234_vm0, %v711_v22  ;;  %v697_v25 = vmul.f32 0.2, %v681_v23 }
 0x11f   : > { %v714_v26 = vmax.f32 %v682_v20, %v698_v24 }
 0x120   : > { %v713_v27 = vmax.f32 %v681_v23, %v697_v25 }
 0x121   : > { %730 = vst.msk [vmem:[%s1448_s11 + $0x78] sm:$0xff] %vm234_vm0, %v714_v26 }
 0x122   : > { %729 = vst.msk [vmem:[%s1448_s11 + $0x70] sm:$0xff] %vm234_vm0, %v713_v27 }
 0x123   : > { %s911_s21 = sshll.u32 %s1157_s15, 1  ;;  %s912_s24 = sshll.u32 %s1161_s16, 5 }
 0x124   : > { %s744_s27 = sadd.s32 %s912_s24, %s911_s21  ;;  %s763_s28 = sshll.u32 %s1448_s11, 4  ;;  %s764_s28 = int_to_ptr.vmem [resolvable:$true] %s763_s28 }
 0x125   : > { %s913_s29 = sshll.u32 %s744_s27, 7  ;;  %s1176_s7 = smov 256  }
 0x126   : > { %s746_s6 = scalar_lea.hbm %s1559_s3, %s913_s29  ;;  %1020 = sst [smem:[#allocation5]] (%p1254_p3), %s1176_s7 }
 0x127   : > { %s1177_s8 = smov 512   ;;  %s1178_s9 = smov 2  }
 0x128   : > { %1021 = sst [smem:[#allocation5 + $0x1]] (%p1254_p3), %s1177_s8  ;;  %s1179_s15 = smov 128  }
 0x129   : > { %1022 = sst [smem:[#allocation5 + $0x2]] (%p1254_p3), %s1178_s9  ;;  %s1180_s16 = smov 8  }
 0x12a   : > { %1023 = sst [smem:[#allocation5 + $0x3]] (%p1254_p3), %s1179_s15  ;;  %s1181_s10 = smov [#allocation4]  }
 0x12b   : > { %1024 = sst [smem:[#allocation5 + $0x4]] (%p1254_p3), %s1179_s15  ;;  %s1182_s11 = smov 0  }
 0x12c   : > { %1025 = sst [smem:[#allocation5 + $0x5]] (%p1254_p3), %s1180_s16 }
 0x12d   : > { %1026 = dma.general (%p1254_p3), %s764_s28, 2048, %s746_s6, %s732_s20, %s1181_s10, [#allocation5], %s1182_s11, 0  }
 0x12e PF: > { %p1032_p0 = scmp.ge.s32.totalorder %s1173_s19, 2  ;;  %s791_s21 = sand.u32 1, %s1145_s12  }
 0x12f   : > { %s792_s24 = scalar_lea.sflag [#allocation3], %s791_s21 }
 0x130   : > { %p1029_p1 = pnand %p1032_p0, %p1263_p8 }
 0x132   : > { %1140 = dma.done.wait (!%p1029_p1), %s792_s24, 2048  }
 0x133   : > { %1142 = vsyncadd (!%p1029_p1), %s792_s24, 4294965248  ;;  %s16_s19 = sadd.s32 1, %s1173_s19   ;;  %s1564_s12 = smov %s1149_s13 }
 0x134   : > { %p13_p2 = scmp.ge.s32.totalorder %s16_s19, 6   ;;  %s1565_s13 = smov %s1153_s14 }
 0x135   : > { %s1566_s14 = smov %s1272_s30  ;;  %s1567_s15 = smov %s1165_s17 }
 0x136   : > { %s1568_s16 = smov %s1169_s18  ;;  %s1569_s17 = smov %s1572_s22 }
 0x137   : > { %s1570_s18 = smov %s1576_s23  ;;  %15 = sbr.rel (!%p13_p2) target bundleno = 5 (0x5), region = 72 }
 0x13e   :  { %797 = vsyncpa [#allocation3], 1 }
 0x13f   :  { %799 = vsyncpa [#allocation3 + $0x1], 1 }

</bundles_post_ra>
